<compile_context>
chip_gen: v7x
topology: tpu7x:2x2x1
jax: 0.10.0
libtpu: 0.0.40
codegen_flags: <defaults>
</compile_context>

<pallas_src>
import math
import jax
import jax.numpy as jnp
from jax.experimental import pallas as pl
from jax.experimental.pallas import tpu as pltpu

RNN_HID_SIZE = 64


def _temporal_decay_kernel(d_ref, wT_ref, b_ref, o_ref):
    # d_ref: (tile, F), wT_ref: (F, H), b_ref: (1, H), o_ref: (tile, H)
    # Native-dtype operands straight to the MXU; f32 accumulation.
    z = jnp.dot(d_ref[...], wT_ref[...], preferred_element_type=jnp.float32)
    z = z + b_ref[...].astype(jnp.float32)          # (tile, H) + (1, H)
    gamma = jnp.exp(-jnp.maximum(z, 0.0))           # exp(-relu(z)) on EUP, f32
    o_ref[...] = gamma.astype(o_ref.dtype)


def temporal_decay(d, W, b, *, row_tile=1024, min_blocks=1, out_dtype=None):
    """TemporalDecay forward.

    d: (..., F)  — any number of leading (time/batch) dims, feature last.
    W: (H, F)    — PyTorch layout (transposed once in the wrapper).
    b: (H,)
    returns gamma with shape (..., H).

    row_tile:   max rows per grid step (default 1024; raise for huge inputs).
    min_blocks: set >= 2 on v7x so the parallel row axis spans both TCs.
    out_dtype:  output dtype (defaults to d.dtype; bf16 halves writeback).
    """
    *lead, F = d.shape
    H, F_w = W.shape
    assert F_w == F and b.shape == (H,)
    out_dtype = out_dtype or d.dtype

    # Flatten all leading dims into one row axis (batch all timesteps).
    d2 = d.reshape(-1, F)
    rows = d2.shape[0]

    # Static parameter prep (constant-folded under jit): present W as (F, H)
    # so the MXU gets a straight (K, N) operand with no in-kernel relayout.
    wT = jnp.asarray(W).T            # (F, H)
    b2 = jnp.asarray(b).reshape(1, H)

    # Row tiling: one big block when everything fits (amortize the fixed
    # per-grid-step cost), otherwise ~row_tile-row blocks.  No wrapper-side
    # padding of d: Pallas masks the ragged last block (OOB reads are unused,
    # OOB stores are dropped).
    if rows <= row_tile and min_blocks <= 1:
        tile = rows                                   # single full-dim block
    else:
        n_blocks = max(min_blocks, pl.cdiv(rows, row_tile))
        tile = max(8, ((pl.cdiv(rows, n_blocks) + 7) // 8) * 8)
    grid = (pl.cdiv(rows, tile),)

    dsz = jnp.dtype(d2.dtype).itemsize
    osz = jnp.dtype(out_dtype).itemsize
    wsz = jnp.dtype(wT.dtype).itemsize
    cost = pl.CostEstimate(
        flops=2 * rows * F * H,
        transcendentals=rows * H,
        bytes_accessed=rows * F * dsz + rows * H * osz + F * H * wsz + H * wsz,
    )

    out = pl.pallas_call(
        _temporal_decay_kernel,
        out_shape=jax.ShapeDtypeStruct((rows, H), out_dtype),
        grid_spec=pltpu.PrefetchScalarGridSpec(
            num_scalar_prefetch=0,
            grid=grid,
            in_specs=[
                # d: tiled over rows
                pl.BlockSpec((tile, F), lambda i: (i, 0)),
                # W^T, b: resident across the whole row grid (DMA'd once)
                pl.BlockSpec((F, H), lambda i: (0, 0)),
                pl.BlockSpec((1, H), lambda i: (0, 0)),
            ],
            out_specs=pl.BlockSpec((tile, H), lambda i: (i, 0)),
        ),
        compiler_params=pltpu.CompilerParams(
            dimension_semantics=("parallel",),   # row axis splits across TCs
        ),
        cost_estimate=cost,
    )(d2, wT, b2)

    return out.reshape(*lead, H)


def reference(d, W, b):
    z = d @ W.T + b
    return jnp.exp(-jnp.maximum(z, 0.0))


if __name__ == "__main__":
    key = jax.random.PRNGKey(0)
    k_d, k_w, k_b = jax.random.split(key, 3)

    T = 32          # timesteps (all batched into one kernel launch)
    B = 8           # batch
    F = 32          # input_size
    H = RNN_HID_SIZE

    # Deterministic parameter init matching PyTorch reset_parameters:
    # uniform(-stdv, stdv) with stdv = 1 / sqrt(H)
    stdv = 1.0 / math.sqrt(H)
    W = jax.random.uniform(k_w, (H, F), jnp.float32, minval=-stdv, maxval=stdv)
    b = jax.random.uniform(k_b, (H,), jnp.float32, minval=-stdv, maxval=stdv)

    # Example input d (time-gap / delta tensor), non-negative like in RITS.
    d = jax.random.uniform(k_d, (T, B, F), jnp.float32, minval=0.0, maxval=5.0)

    out = temporal_decay(d, W, b)            # rows = T*B = 256 -> grid = (1,)
    out = jax.block_until_ready(out)

    ref = reference(d.reshape(-1, F), W, b).reshape(T, B, H)
    assert out.shape == (T, B, H)
    assert jnp.allclose(out, ref, atol=1e-5, rtol=1e-5), "mismatch vs reference"

    # Also exercise the multi-block / megacore-style path once (grid >= 2).
    out2 = temporal_decay(d, W, b, row_tile=128, min_blocks=2)
    out2 = jax.block_until_ready(out2)
    assert jnp.allclose(out2, ref, atol=1e-5, rtol=1e-5), "mismatch (tiled)"

    print("KERNEL_OK")
</pallas_src>

<mosaic_0001>
module attributes {stable_mosaic.version = 11 : i64} {
  func.func @_temporal_decay_kernel(%arg0: i32, %arg1: memref<256x32xf32, #tpu.memory_space<vmem>>, %arg2: memref<32x64xf32, #tpu.memory_space<vmem>>, %arg3: memref<1x64xf32, #tpu.memory_space<vmem>>, %arg4: memref<256x64xf32, #tpu.memory_space<vmem>>) attributes {dimension_semantics = [#tpu.dimension_semantics<parallel>], iteration_bounds = array<i64: 1>, scalar_prefetch = 0 : i64, scratch_operands = 0 : i64, tpu.core_type = #tpu.core_type<tc>, window_params = [{transform_indices = @transform_0, window_bounds = array<i64: 256, 32>}, {pipeline_mode = #tpu.pipeline_mode<synchronous>, transform_indices = @transform_1, window_bounds = array<i64: 32, 64>}, {pipeline_mode = #tpu.pipeline_mode<synchronous>, transform_indices = @transform_2, window_bounds = array<i64: 1, 64>}, {transform_indices = @transform_3, window_bounds = array<i64: 256, 64>}]} {
    %c0 = arith.constant 0 : index
    %c0_0 = arith.constant 0 : index
    %0 = vector.load %arg1[%c0, %c0_0] : memref<256x32xf32, #tpu.memory_space<vmem>>, vector<256x32xf32>
    %c0_1 = arith.constant 0 : index
    %c0_2 = arith.constant 0 : index
    %1 = vector.load %arg2[%c0_1, %c0_2] : memref<32x64xf32, #tpu.memory_space<vmem>>, vector<32x64xf32>
    %cst = arith.constant dense<0.000000e+00> : vector<256x64xf32>
    %2 = tpu.matmul %0, %1, %cst {dimension_numbers = #tpu.dot_dimension_numbers<[1], [0], [0], [1], [0, 0, 1, 1], [], []>} : vector<256x32xf32>, vector<32x64xf32>, vector<256x64xf32> -> vector<256x64xf32>
    %c0_3 = arith.constant 0 : index
    %c0_4 = arith.constant 0 : index
    %3 = vector.load %arg3[%c0_3, %c0_4] : memref<1x64xf32, #tpu.memory_space<vmem>>, vector<1x64xf32>
    %4 = vector.broadcast %3 : vector<1x64xf32> to vector<256x64xf32>
    %5 = arith.addf %2, %4 : vector<256x64xf32>
    %cst_5 = arith.constant 0.000000e+00 : f32
    %6 = vector.broadcast %cst_5 : f32 to vector<256x64xf32>
    %7 = arith.maximumf %5, %6 : vector<256x64xf32>
    %cst_6 = arith.constant 0.000000e+00 : f32
    %8 = vector.broadcast %cst_6 : f32 to vector<256x64xf32>
    %9 = arith.subf %8, %7 : vector<256x64xf32>
    %10 = math.exp %9 : vector<256x64xf32>
    %c0_7 = arith.constant 0 : index
    %c0_8 = arith.constant 0 : index
    %11 = vector.load %arg4[%c0_7, %c0_8] : memref<256x64xf32, #tpu.memory_space<vmem>>, vector<256x64xf32>
    tpu.vector_store %arg4[%c0_7, %c0_8], %10 {strides = array<i32>} : memref<256x64xf32, #tpu.memory_space<vmem>>, vector<256x64xf32>,
    return
  }
  func.func @transform_0(%arg0: i32) -> (i32, i32) {
    %c0_i32 = arith.constant 0 : i32
    %c0_i32_0 = arith.constant 0 : i32
    return %arg0, %c0_i32 : i32, i32
  }
  func.func @transform_1(%arg0: i32) -> (i32, i32) {
    %c0_i32 = arith.constant 0 : i32
    %c0_i32_0 = arith.constant 0 : i32
    %c0_i32_1 = arith.constant 0 : i32
    return %c0_i32, %c0_i32_0 : i32, i32
  }
  func.func @transform_2(%arg0: i32) -> (i32, i32) {
    %c0_i32 = arith.constant 0 : i32
    %c0_i32_0 = arith.constant 0 : i32
    %c0_i32_1 = arith.constant 0 : i32
    return %c0_i32, %c0_i32_0 : i32, i32
  }
  func.func @transform_3(%arg0: i32) -> (i32, i32) {
    %c0_i32 = arith.constant 0 : i32
    %c0_i32_0 = arith.constant 0 : i32
    return %arg0, %c0_i32 : i32, i32
  }
}

</mosaic_0001>

<bundles_post_ra>
// kernel: tpu_custom_call.1
= control target key start
LH: loop header
LB: loop body
LE: loop exit
PB: predicated region body
PF: predicated region fallthrough
CT: control target
= control target key end

     0   :  { %vm57_vm0 = vcmask 261120   ;;  %vm507_vm1 = vcmask 523264   ;;  %s1070_s1 = inlined_call_operand.vmem [shape: f32[32,64], index: 1, kind: input, shape index: {}]   ;;  %s1071_s0 = inlined_call_operand.vmem [shape: f32[256,32], index: 0, kind: input, shape index: {}]   ;;  %s1072_s2 = inlined_call_operand.vmem [shape: f32[1,64], index: 2, kind: input, shape index: {}]   ;;  %s1073_s3 = inlined_call_operand.vmem [shape: f32[256,64], index: 3, kind: output, shape index: {}]  }
   0x1   :  { %v46_v0 = vld [vmem:[%s1070_s1] sm:$0xff]  ;;  %v47_v1 = vld [vmem:[%s1070_s1 + $0x8] sm:$0xff]  ;;  %v48_v2 = vld [vmem:[%s1070_s1 + $0x10] sm:$0xff] }
   0x2   :  { %v669_v3 = vpack.c.bf16 %v47_v1, %v46_v0  ;;  %v49_v4 = vld [vmem:[%s1070_s1 + $0x18] sm:$0xff]  ;;  %v14_v5 = vld [vmem:[%s1071_s0] sm:$0xff]  ;;  %v15_v8 = vld [vmem:[%s1071_s0 + $0x8] sm:$0xff] }
   0x3   :  { %v30_v6 = vld [vmem:[%s1071_s0 + $0x80] sm:$0xff]  ;;  %v673_v7 = vpack.c.bf16 %v49_v4, %v48_v2  ;;  %621 = vmatprep.mubr.msk.f32.mxu0 %vm57_vm0, %v14_v5  ;;  %v31_v9 = vld [vmem:[%s1071_s0 + $0x88] sm:$0xff]  ;;  %v16_v10 = vld [vmem:[%s1071_s0 + $0x10] sm:$0xff] }
   0x4   :  { %645 = vmatprep.mubr.msk.f32.mxu1 %vm57_vm0, %v30_v6  ;;  %670 = vmatprep.subr.bf16.mxu0 %v669_v3  ;;  %v32_v11 = vld [vmem:[%s1071_s0 + $0x90] sm:$0xff]  ;;  %v17_v12 = vld [vmem:[%s1071_s0 + $0x18] sm:$0xff]  ;;  %v18_v14 = vld [vmem:[%s1071_s0 + $0x20] sm:$0xff] }
   0x5   :  { %677 = vmatprep.subr.bf16.mxu1 %v669_v3  ;;  %672 = vmatpush3.bf16.msra.mxu0 %v669_v3  ;;  %v33_v13 = vld [vmem:[%s1071_s0 + $0x98] sm:$0xff]  ;;  %v34_v15 = vld [vmem:[%s1071_s0 + $0xa0] sm:$0xff]  ;;  %v19_v16 = vld [vmem:[%s1071_s0 + $0x28] sm:$0xff] }
   0x6   :  { %679 = vmatpush3.bf16.msra.mxu1 %v669_v3  ;;  %674 = vmatprep.subr.bf16.mxu0 %v673_v7  ;;  %v35_v17 = vld [vmem:[%s1071_s0 + $0xa8] sm:$0xff]  ;;  %v20_v18 = vld [vmem:[%s1071_s0 + $0x30] sm:$0xff]  ;;  %v21_v20 = vld [vmem:[%s1071_s0 + $0x38] sm:$0xff] }
   0x7   :  { %678 = vmatprep.subr.bf16.mxu1 %v673_v7  ;;  %v36_v19 = vld [vmem:[%s1071_s0 + $0xb0] sm:$0xff]  ;;  %v37_v21 = vld [vmem:[%s1071_s0 + $0xb8] sm:$0xff]  ;;  %v22_v22 = vld [vmem:[%s1071_s0 + $0x40] sm:$0xff] }
   0x8   :  { %v38_v23 = vld [vmem:[%s1071_s0 + $0xc0] sm:$0xff]  ;;  %v23_v24 = vld [vmem:[%s1071_s0 + $0x48] sm:$0xff]  ;;  %v24_v26 = vld [vmem:[%s1071_s0 + $0x50] sm:$0xff] }
   0x9   :  { %676 = vmatpush3.bf16.msra.mxu0 %v673_v7  ;;  %v39_v25 = vld [vmem:[%s1071_s0 + $0xc8] sm:$0xff]  ;;  %v40_v27 = vld [vmem:[%s1071_s0 + $0xd0] sm:$0xff]  ;;  %v25_v28 = vld [vmem:[%s1071_s0 + $0x58] sm:$0xff] }
   0xa   :  { %680 = vmatpush3.bf16.msra.mxu1 %v673_v7  ;;  %v41_v29 = vld [vmem:[%s1071_s0 + $0xd8] sm:$0xff]  ;;  %v26_v30 = vld [vmem:[%s1071_s0 + $0x60] sm:$0xff]  ;;  %v27_v32 = vld [vmem:[%s1071_s0 + $0x68] sm:$0xff] }
   0xb   :  { %v42_v31 = vld [vmem:[%s1071_s0 + $0xe0] sm:$0xff]  ;;  %v43_v33 = vld [vmem:[%s1071_s0 + $0xe8] sm:$0xff]  ;;  %v28_v34 = vld [vmem:[%s1071_s0 + $0x70] sm:$0xff] }
   0xc   :  { %622 = vmatmul.mubr.msk.f32.vlgmr.msra.gmra.mrb[0].mxu0 %vm57_vm0, %v15_v8  ;;  %v44_v35 = vld [vmem:[%s1071_s0 + $0xf0] sm:$0xff]  ;;  %v29_v36 = vld [vmem:[%s1071_s0 + $0x78] sm:$0xff]  ;;  %v908_v38 = vld [vmem:[%s1072_s2] ss:$0 sm:$0xff] }
   0xd   :  { %646 = vmatmul.mubr.msk.f32.vlgmr.msra.gmra.mrb[0].mxu1 %vm57_vm0, %v31_v9  ;;  %624 = vmatprep.mubr.msk.f32.mxu0 %vm57_vm0, %v16_v10  ;;  %v45_v37 = vld [vmem:[%s1071_s0 + $0xf8] sm:$0xff] }
   0xe   :  { %648 = vmatprep.mubr.msk.f32.mxu1 %vm57_vm0, %v32_v11 }
  0x10   :  { %625 = vmatmul.mubr.msk.f32.gmra.mrb[2].mxu0 %vm57_vm0, %v17_v12 }
  0x11   :  { %649 = vmatmul.mubr.msk.f32.gmra.mrb[2].mxu1 %vm57_vm0, %v33_v13  ;;  %627 = vmatprep.mubr.msk.f32.mxu0 %vm57_vm0, %v18_v14 }
  0x12   :  { %651 = vmatprep.mubr.msk.f32.mxu1 %vm57_vm0, %v34_v15 }
  0x14   :  { %628 = vmatmul.mubr.msk.f32.gmra.mrb[4].mxu0 %vm57_vm0, %v19_v16 }
  0x15   :  { %652 = vmatmul.mubr.msk.f32.gmra.mrb[4].mxu1 %vm57_vm0, %v35_v17  ;;  %630 = vmatprep.mubr.msk.f32.mxu0 %vm57_vm0, %v20_v18 }
  0x16   :  { %654 = vmatprep.mubr.msk.f32.mxu1 %vm57_vm0, %v36_v19 }
  0x18   :  { %631 = vmatmul.mubr.msk.f32.gmra.mrb[6].mxu0 %vm57_vm0, %v21_v20 }
  0x19   :  { %655 = vmatmul.mubr.msk.f32.gmra.mrb[6].mxu1 %vm57_vm0, %v37_v21  ;;  %633 = vmatprep.mubr.msk.f32.mxu0 %vm57_vm0, %v22_v22 }
  0x1a   :  { %657 = vmatprep.mubr.msk.f32.mxu1 %vm57_vm0, %v38_v23 }
  0x1c   :  { %634 = vmatmul.mubr.msk.f32.gmra.mrb[8].mxu0 %vm57_vm0, %v23_v24 }
  0x1d   :  { %658 = vmatmul.mubr.msk.f32.gmra.mrb[8].mxu1 %vm57_vm0, %v39_v25  ;;  %636 = vmatprep.mubr.msk.f32.mxu0 %vm57_vm0, %v24_v26 }
  0x1e   :  { %660 = vmatprep.mubr.msk.f32.mxu1 %vm57_vm0, %v40_v27 }
  0x20   :  { %637 = vmatmul.mubr.msk.f32.gmra.mrb[10].mxu0 %vm57_vm0, %v25_v28 }
  0x21   :  { %661 = vmatmul.mubr.msk.f32.gmra.mrb[10].mxu1 %vm57_vm0, %v41_v29  ;;  %639 = vmatprep.mubr.msk.f32.mxu0 %vm57_vm0, %v26_v30 }
  0x22   :  { %663 = vmatprep.mubr.msk.f32.mxu1 %vm57_vm0, %v42_v31 }
  0x24   :  { %640 = vmatmul.mubr.msk.f32.gmra.mrb[12].mxu0 %vm57_vm0, %v27_v32 }
  0x25   :  { %664 = vmatmul.mubr.msk.f32.gmra.mrb[12].mxu1 %vm57_vm0, %v43_v33  ;;  %642 = vmatprep.mubr.msk.f32.mxu0 %vm57_vm0, %v28_v34 }
  0x26   :  { %666 = vmatprep.mubr.msk.f32.mxu1 %vm57_vm0, %v44_v35 }
  0x28   :  { %643 = vmatmul.mubr.msk.f32.gmra.mrb[14].mxu0 %vm57_vm0, %v29_v36 }
  0x29   :  { %667 = vmatmul.mubr.msk.f32.gmra.mrb[14].mxu1 %vm57_vm0, %v45_v37 }
  0xdf   :  { %v623_v39 = vpop.f32.mrb[0].mxu0 }
  0xe0   :  { %v647_v40 = vpop.f32.mrb[0].mxu1  ;;  %v226_v41 = vadd.f32 %v623_v39, %v908_v38  ;;  %v220_v43 = vpop.f32.mrb[1].mxu0 }
  0xe1   :  { %v306_v42 = vadd.f32 %v647_v40, %v908_v38  ;;  %v300_v44 = vpop.f32.mrb[1].mxu1  ;;  %v221_v45 = vadd.f32 %v908_v38, %v220_v43 }
  0xe2   :  { %v301_v46 = vadd.f32 %v908_v38, %v300_v44  ;;  %v380_v47 = vmax.f32 %v226_v41, 0.0 }
  0xe3   :  { %v396_v48 = vmax.f32 %v306_v42, 0.0  ;;  %v379_v49 = vmax.f32 %v221_v45, 0.0  ;;  %v626_v51 = vpop.f32.mrb[2].mxu0 }
  0xe4   :  { %v395_v50 = vmax.f32 %v301_v46, 0.0  ;;  %v650_v52 = vpop.f32.mrb[2].mxu1  ;;  %v412_v53 = vsub.f32 0.0, %v380_v47  ;;  %v236_v55 = vadd.f32 %v626_v51, %v908_v38  ;;  %v230_v57 = vpop.f32.mrb[3].mxu0 }
  0xe5   :  { %v428_v54 = vsub.f32 0.0, %v396_v48  ;;  %v316_v56 = vadd.f32 %v650_v52, %v908_v38  ;;  %v310_v58 = vpop.f32.mrb[3].mxu1  ;;  %v411_v59 = vsub.f32 0.0, %v379_v49  ;;  %v231_v61 = vadd.f32 %v908_v38, %v230_v57 }
  0xe6   :  { %v427_v60 = vsub.f32 0.0, %v395_v50  ;;  %v311_v62 = vadd.f32 %v908_v38, %v310_v58  ;;  %v445_v63 = vmul.f32 1.442695, %v412_v53  ;;  %v382_v1 = vmax.f32 %v236_v55, 0.0 }
  0xe7   :  { %v477_v0 = vmul.f32 1.442695, %v428_v54  ;;  %v398_v2 = vmax.f32 %v316_v56, 0.0  ;;  %v443_v3 = vmul.f32 1.442695, %v411_v59  ;;  %v381_v5 = vmax.f32 %v231_v61, 0.0 }
  0xe8   :  { %v475_v4 = vmul.f32 1.442695, %v427_v60  ;;  %v397_v6 = vmax.f32 %v311_v62, 0.0  ;;  %681 = vpow2.f32 %v445_v63  ;;  %v414_v7 = vsub.f32 0.0, %v382_v1  ;;  %v629_v9 = vpop.f32.mrb[4].mxu0  ;;  %v653_v10 = vpop.f32.mrb[4].mxu1 }
  0xe9   :  { %v430_v8 = vsub.f32 0.0, %v398_v2  ;;  %683 = vpow2.f32 %v477_v0  ;;  %v413_v11 = vsub.f32 0.0, %v381_v5  ;;  %v246_v13 = vadd.f32 %v629_v9, %v908_v38  ;;  %v240_v14 = vpop.f32.mrb[5].mxu0  ;;  %v320_v15 = vpop.f32.mrb[5].mxu1 }
  0xea   :  { %v429_v12 = vsub.f32 0.0, %v397_v6  ;;  %685 = vpow2.f32 %v443_v3  ;;  %v449_v16 = vmul.f32 1.442695, %v414_v7  ;;  %v326_v18 = vadd.f32 %v653_v10, %v908_v38 }
  0xeb   :  { %v481_v17 = vmul.f32 1.442695, %v430_v8  ;;  %687 = vpow2.f32 %v475_v4  ;;  %v447_v19 = vmul.f32 1.442695, %v413_v11  ;;  %v384_v21 = vmax.f32 %v246_v13, 0.0  ;;  %v632_v22 = vpop.f32.mrb[6].mxu0 }
  0xec   :  { %v479_v20 = vmul.f32 1.442695, %v429_v12  ;;  %689 = vpow2.f32 %v449_v16  ;;  %v400_v23 = vmax.f32 %v326_v18, 0.0  ;;  %v241_v24 = vadd.f32 %v908_v38, %v240_v14  ;;  %v656_v26 = vpop.f32.mrb[6].mxu1  ;;  %v250_v27 = vpop.f32.mrb[7].mxu0 }
  0xed   :  { %v321_v25 = vadd.f32 %v908_v38, %v320_v15  ;;  %691 = vpow2.f32 %v481_v17  ;;  %v416_v28 = vsub.f32 0.0, %v384_v21  ;;  %v256_v29 = vadd.f32 %v632_v22, %v908_v38  ;;  %v330_v31 = vpop.f32.mrb[7].mxu1 }
  0xee   :  { %v336_v30 = vadd.f32 %v656_v26, %v908_v38  ;;  %693 = vpow2.f32 %v447_v19  ;;  %v432_v32 = vsub.f32 0.0, %v400_v23  ;;  %v383_v33 = vmax.f32 %v241_v24, 0.0 }
  0xef   :  { %v399_v34 = vmax.f32 %v321_v25, 0.0  ;;  %695 = vpow2.f32 %v479_v20  ;;  %v453_v35 = vmul.f32 1.442695, %v416_v28  ;;  %v386_v36 = vmax.f32 %v256_v29, 0.0  ;;  %v635_v39 = vpop.f32.mrb[8].mxu0 }
  0xf0   :  { %v402_v37 = vmax.f32 %v336_v30, 0.0  ;;  %v659_v40 = vpop.f32.mrb[8].mxu1  ;;  %v485_v41 = vmul.f32 1.442695, %v432_v32  ;;  %v415_v42 = vsub.f32 0.0, %v383_v33  ;;  %v251_v44 = vadd.f32 %v908_v38, %v250_v27  ;;  %v260_v45 = vpop.f32.mrb[9].mxu0 }
  0xf1   :  { %v431_v43 = vsub.f32 0.0, %v399_v34  ;;  %v340_v46 = vpop.f32.mrb[9].mxu1  ;;  %697 = vpow2.f32 %v453_v35  ;;  %v418_v47 = vsub.f32 0.0, %v386_v36  ;;  %v331_v49 = vadd.f32 %v908_v38, %v330_v31 }
  0xf2   :  { %v434_v48 = vsub.f32 0.0, %v402_v37  ;;  %v682_v50 = vpop.eup %681  ;;  %699 = vpow2.f32 %v485_v41  ;;  %v451_v51 = vmul.f32 1.442695, %v415_v42  ;;  %v385_v53 = vmax.f32 %v251_v44, 0.0 }
  0xf3   :  { %v483_v52 = vmul.f32 1.442695, %v431_v43  ;;  %v684_v54 = vpop.eup %683  ;;  %509 = vst.msk [vmem:[%s1073_s3 + $0x8] sm:$0xff] %vm507_vm1, %v682_v50  ;;  %v457_v55 = vmul.f32 1.442695, %v418_v47  ;;  %v401_v57 = vmax.f32 %v331_v49, 0.0  ;;  %v266_v58 = vadd.f32 %v635_v39, %v908_v38 }
  0xf4   :  { %v489_v56 = vmul.f32 1.442695, %v434_v48  ;;  %v638_v59 = vpop.f32.mrb[10].mxu0  ;;  %v686_v60 = vpop.eup %685  ;;  %525 = vst.msk [vmem:[%s1073_s3 + $0x88] sm:$0xff] %vm507_vm1, %v684_v54  ;;  %701 = vpow2.f32 %v451_v51  ;;  %v417_v61 = vsub.f32 0.0, %v385_v53  ;;  %v346_v62 = vadd.f32 %v659_v40, %v908_v38 }
  0xf5   :  { %v261_v63 = vadd.f32 %v908_v38, %v260_v45  ;;  %v662_v0 = vpop.f32.mrb[10].mxu1  ;;  %v270_v1 = vpop.f32.mrb[11].mxu0  ;;  %508 = vst.msk [vmem:[%s1073_s3] sm:$0xff] %vm507_vm1, %v686_v60  ;;  %703 = vpow2.f32 %v483_v52  ;;  %v433_v3 = vsub.f32 0.0, %v401_v57  ;;  %v388_v4 = vmax.f32 %v266_v58, 0.0 }
  0xf6   :  { %v688_v2 = vpop.eup %687  ;;  %v341_v5 = vadd.f32 %v908_v38, %v340_v46  ;;  %v350_v6 = vpop.f32.mrb[11].mxu1  ;;  %705 = vpow2.f32 %v457_v55  ;;  %v455_v8 = vmul.f32 1.442695, %v417_v61  ;;  %v404_v9 = vmax.f32 %v346_v62, 0.0 }
  0xf7   :  { %v690_v7 = vpop.eup %689  ;;  %524 = vst.msk [vmem:[%s1073_s3 + $0x80] sm:$0xff] %vm507_vm1, %v688_v2  ;;  %v387_v10 = vmax.f32 %v261_v63, 0.0  ;;  %707 = vpow2.f32 %v489_v56  ;;  %v487_v12 = vmul.f32 1.442695, %v433_v3  ;;  %v420_v13 = vsub.f32 0.0, %v388_v4  ;;  %v641_v15 = vpop.f32.mrb[12].mxu0 }
  0xf8   :  { %v692_v11 = vpop.eup %691  ;;  %511 = vst.msk [vmem:[%s1073_s3 + $0x18] sm:$0xff] %vm507_vm1, %v690_v7  ;;  %v403_v14 = vmax.f32 %v341_v5, 0.0  ;;  %v665_v16 = vpop.f32.mrb[12].mxu1  ;;  %709 = vpow2.f32 %v455_v8  ;;  %v436_v18 = vsub.f32 0.0, %v404_v9  ;;  %v276_v20 = vadd.f32 %v638_v59, %v908_v38 }
  0xf9   :  { %v694_v17 = vpop.eup %693  ;;  %527 = vst.msk [vmem:[%s1073_s3 + $0x98] sm:$0xff] %vm507_vm1, %v692_v11  ;;  %v419_v19 = vsub.f32 0.0, %v387_v10  ;;  %v280_v21 = vpop.f32.mrb[13].mxu0  ;;  %711 = vpow2.f32 %v487_v12  ;;  %v461_v24 = vmul.f32 1.442695, %v420_v13  ;;  %v356_v26 = vadd.f32 %v662_v0, %v908_v38 }
  0xfa   :  { %v360_v22 = vpop.f32.mrb[13].mxu1  ;;  %v696_v23 = vpop.eup %695  ;;  %510 = vst.msk [vmem:[%s1073_s3 + $0x10] sm:$0xff] %vm507_vm1, %v694_v17  ;;  %v435_v25 = vsub.f32 0.0, %v403_v14  ;;  %v493_v27 = vmul.f32 1.442695, %v436_v18  ;;  %v390_v29 = vmax.f32 %v276_v20, 0.0  ;;  %v271_v30 = vadd.f32 %v908_v38, %v270_v1 }
  0xfb   :  { %526 = vst.msk [vmem:[%s1073_s3 + $0x90] sm:$0xff] %vm507_vm1, %v696_v23  ;;  %v459_v28 = vmul.f32 1.442695, %v419_v19  ;;  %v698_v31 = vpop.eup %697  ;;  %713 = vpow2.f32 %v461_v24  ;;  %v406_v33 = vmax.f32 %v356_v26, 0.0  ;;  %v351_v34 = vadd.f32 %v908_v38, %v350_v6  ;;  %v644_v35 = vpop.f32.mrb[14].mxu0 }
  0xfc   :  { %v491_v32 = vmul.f32 1.442695, %v435_v25  ;;  %v668_v36 = vpop.f32.mrb[14].mxu1  ;;  %v700_v37 = vpop.eup %699  ;;  %513 = vst.msk [vmem:[%s1073_s3 + $0x28] sm:$0xff] %vm507_vm1, %v698_v31  ;;  %715 = vpow2.f32 %v493_v27  ;;  %v422_v39 = vsub.f32 0.0, %v390_v29  ;;  %v389_v40 = vmax.f32 %v271_v30, 0.0 }
  0xfd   :  { %v286_v41 = vadd.f32 %v641_v15, %v908_v38  ;;  %v290_v42 = vpop.f32.mrb[15].mxu0  ;;  %v370_v43 = vpop.f32.mrb[15].mxu1  ;;  %529 = vst.msk [vmem:[%s1073_s3 + $0xa8] sm:$0xff] %vm507_vm1, %v700_v37  ;;  %717 = vpow2.f32 %v459_v28  ;;  %v438_v44 = vsub.f32 0.0, %v406_v33  ;;  %v405_v45 = vmax.f32 %v351_v34, 0.0 }
  0xfe   :  { %v366_v46 = vadd.f32 %v665_v16, %v908_v38  ;;  %v702_v47 = vpop.eup %701  ;;  %719 = vpow2.f32 %v491_v32  ;;  %v465_v48 = vmul.f32 1.442695, %v422_v39  ;;  %v421_v49 = vsub.f32 0.0, %v389_v40 }
  0xff   :  { %v392_v50 = vmax.f32 %v286_v41, 0.0  ;;  %v704_v51 = vpop.eup %703  ;;  %512 = vst.msk [vmem:[%s1073_s3 + $0x20] sm:$0xff] %vm507_vm1, %v702_v47  ;;  %v497_v52 = vmul.f32 1.442695, %v438_v44  ;;  %v437_v53 = vsub.f32 0.0, %v405_v45  ;;  %v281_v55 = vadd.f32 %v908_v38, %v280_v21 }
 0x100   :  { %v408_v54 = vmax.f32 %v366_v46, 0.0  ;;  %v706_v56 = vpop.eup %705  ;;  %528 = vst.msk [vmem:[%s1073_s3 + $0xa0] sm:$0xff] %vm507_vm1, %v704_v51  ;;  %721 = vpow2.f32 %v465_v48  ;;  %v463_v57 = vmul.f32 1.442695, %v421_v49  ;;  %v361_v59 = vadd.f32 %v908_v38, %v360_v22 }
 0x101   :  { %v424_v58 = vsub.f32 0.0, %v392_v50  ;;  %v708_v60 = vpop.eup %707  ;;  %515 = vst.msk [vmem:[%s1073_s3 + $0x38] sm:$0xff] %vm507_vm1, %v706_v56  ;;  %723 = vpow2.f32 %v497_v52  ;;  %v495_v61 = vmul.f32 1.442695, %v437_v53  ;;  %v391_v63 = vmax.f32 %v281_v55, 0.0 }
 0x102   :  { %v440_v62 = vsub.f32 0.0, %v408_v54  ;;  %v710_v0 = vpop.eup %709  ;;  %531 = vst.msk [vmem:[%s1073_s3 + $0xb8] sm:$0xff] %vm507_vm1, %v708_v60  ;;  %725 = vpow2.f32 %v463_v57  ;;  %v407_v2 = vmax.f32 %v361_v59, 0.0  ;;  %v296_v3 = vadd.f32 %v644_v35, %v908_v38 }
 0x103   :  { %v469_v1 = vmul.f32 1.442695, %v424_v58  ;;  %v712_v4 = vpop.eup %711  ;;  %514 = vst.msk [vmem:[%s1073_s3 + $0x30] sm:$0xff] %vm507_vm1, %v710_v0  ;;  %727 = vpow2.f32 %v495_v61  ;;  %v423_v6 = vsub.f32 0.0, %v391_v63  ;;  %v376_v7 = vadd.f32 %v668_v36, %v908_v38 }
 0x104   :  { %v501_v5 = vmul.f32 1.442695, %v440_v62  ;;  %530 = vst.msk [vmem:[%s1073_s3 + $0xb0] sm:$0xff] %vm507_vm1, %v712_v4  ;;  %v439_v8 = vsub.f32 0.0, %v407_v2  ;;  %v394_v9 = vmax.f32 %v296_v3, 0.0  ;;  %v291_v10 = vadd.f32 %v908_v38, %v290_v42 }
 0x105   :  { %729 = vpow2.f32 %v469_v1  ;;  %v714_v11 = vpop.eup %713  ;;  %v467_v12 = vmul.f32 1.442695, %v423_v6  ;;  %v410_v13 = vmax.f32 %v376_v7, 0.0  ;;  %v371_v14 = vadd.f32 %v908_v38, %v370_v43 }
 0x106   :  { %731 = vpow2.f32 %v501_v5  ;;  %v716_v15 = vpop.eup %715  ;;  %517 = vst.msk [vmem:[%s1073_s3 + $0x48] sm:$0xff] %vm507_vm1, %v714_v11  ;;  %v499_v16 = vmul.f32 1.442695, %v439_v8  ;;  %v426_v17 = vsub.f32 0.0, %v394_v9  ;;  %v393_v18 = vmax.f32 %v291_v10, 0.0 }
 0x107   :  { %v718_v19 = vpop.eup %717  ;;  %533 = vst.msk [vmem:[%s1073_s3 + $0xc8] sm:$0xff] %vm507_vm1, %v716_v15  ;;  %733 = vpow2.f32 %v467_v12  ;;  %v442_v20 = vsub.f32 0.0, %v410_v13  ;;  %v409_v21 = vmax.f32 %v371_v14, 0.0 }
 0x108   :  { %v720_v22 = vpop.eup %719  ;;  %516 = vst.msk [vmem:[%s1073_s3 + $0x40] sm:$0xff] %vm507_vm1, %v718_v19  ;;  %735 = vpow2.f32 %v499_v16  ;;  %v473_v38 = vmul.f32 1.442695, %v426_v17  ;;  %v425_v23 = vsub.f32 0.0, %v393_v18 }
 0x109   :  { %532 = vst.msk [vmem:[%s1073_s3 + $0xc0] sm:$0xff] %vm507_vm1, %v720_v22  ;;  %v505_v24 = vmul.f32 1.442695, %v442_v20  ;;  %v441_v25 = vsub.f32 0.0, %v409_v21 }
 0x10a   :  { %v722_v26 = vpop.eup %721  ;;  %737 = vpow2.f32 %v473_v38  ;;  %v471_v27 = vmul.f32 1.442695, %v425_v23 }
 0x10b   :  { %v724_v28 = vpop.eup %723  ;;  %519 = vst.msk [vmem:[%s1073_s3 + $0x58] sm:$0xff] %vm507_vm1, %v722_v26  ;;  %739 = vpow2.f32 %v505_v24  ;;  %v503_v29 = vmul.f32 1.442695, %v441_v25 }
 0x10c   :  { %v726_v30 = vpop.eup %725  ;;  %535 = vst.msk [vmem:[%s1073_s3 + $0xd8] sm:$0xff] %vm507_vm1, %v724_v28  ;;  %741 = vpow2.f32 %v471_v27 }
 0x10d   :  { %v728_v31 = vpop.eup %727  ;;  %518 = vst.msk [vmem:[%s1073_s3 + $0x50] sm:$0xff] %vm507_vm1, %v726_v30  ;;  %743 = vpow2.f32 %v503_v29 }
 0x10e   :  { %534 = vst.msk [vmem:[%s1073_s3 + $0xd0] sm:$0xff] %vm507_vm1, %v728_v31 }
 0x10f   :  { %v730_v32 = vpop.eup %729 }
 0x110   :  { %v732_v33 = vpop.eup %731  ;;  %521 = vst.msk [vmem:[%s1073_s3 + $0x68] sm:$0xff] %vm507_vm1, %v730_v32 }
 0x111   :  { %537 = vst.msk [vmem:[%s1073_s3 + $0xe8] sm:$0xff] %vm507_vm1, %v732_v33  ;;  %v734_v34 = vpop.eup %733 }
 0x112   :  { %v736_v35 = vpop.eup %735  ;;  %520 = vst.msk [vmem:[%s1073_s3 + $0x60] sm:$0xff] %vm507_vm1, %v734_v34 }
 0x113   :  { %536 = vst.msk [vmem:[%s1073_s3 + $0xe0] sm:$0xff] %vm507_vm1, %v736_v35 }
 0x114   :  { %v738_v36 = vpop.eup %737 }
 0x115   :  { %v740_v37 = vpop.eup %739  ;;  %523 = vst.msk [vmem:[%s1073_s3 + $0x78] sm:$0xff] %vm507_vm1, %v738_v36 }
 0x116   :  { %v742_v39 = vpop.eup %741  ;;  %539 = vst.msk [vmem:[%s1073_s3 + $0xf8] sm:$0xff] %vm507_vm1, %v740_v37 }
 0x117   :  { %v744_v40 = vpop.eup %743  ;;  %522 = vst.msk [vmem:[%s1073_s3 + $0x70] sm:$0xff] %vm507_vm1, %v742_v39 }
 0x118   :  { %538 = vst.msk [vmem:[%s1073_s3 + $0xf0] sm:$0xff] %vm507_vm1, %v744_v40 }

</bundles_post_ra>
